<compile_context>
chip_gen: v7x
topology: tpu7x:2x2x1
jax: 0.10.0
libtpu: 0.0.40
codegen_flags: <defaults>
</compile_context>

<pallas_src>
import numpy as np
import jax
import jax.numpy as jnp
from jax.experimental import pallas as pl
from jax.experimental.pallas import tpu as pltpu

# ---- static model configuration (small shapes consistent with the module) ----
B         = 2    # batch size
IN_DIM    = 4    # in_dim (e.g. number of electrodes)
RUNWAY    = 8    # runway length in time steps
NUM_BASES = 6    # number of temporal bases
TRIAL_LEN = 16   # forecast horizon (trial_len)
STIMDIM   = 3    # stimulation-descriptor dimensionality
LATENT    = 32   # latent_dim of the Bases MLP

RD  = RUNWAY * IN_DIM            # 32  flattened runway features
KD  = RD * IN_DIM                # 128 expanded contraction dim (k, d') for the bw matmul
BD  = B * IN_DIM                 # 8   (b, d) lanes of the compact basis weights
BT  = B * TRIAL_LEN              # 32  samples of the bases MLP
C   = B * TRIAL_LEN * IN_DIM     # 128 output lanes, c = b*T*D + t*D + d
NB1 = NUM_BASES + 1              # 7   extra row carries the x0 (last z-scored step) term

# ---- parameter-slab row offsets (all 8-aligned, lane offset 0) ----
ROW_A   = 0      # A_full      (NB1, KD)   z-scored/permuted basis_weighting (+x0 row)
ROW_E   = 8      # E           (BD, C)     0/1 lane expansion (b,d) -> c
ROW_R   = 16     # R           (BT, C)     0/1 lane expansion (b,t) -> c
ROW_W0T = 48     # w0^T        (LATENT, STIMDIM)
ROW_W1T = 80     # w1^T        (LATENT, LATENT)
ROW_W2T = 112    # w2^T ext    (NB1, LATENT)   row NUM_BASES is zero
ROW_BS  = 120    # bias_small  (NB1, BD)
ROW_B0  = 128    # b0 column   (LATENT, 1)
ROW_B1  = 160    # b1 column   (LATENT, 1)
ROW_B2  = 192    # b2 ext col  (NB1, 1)        row NUM_BASES is one
SLAB_ROWS = 200
SLAB_COLS = 128


def tbfm_kernel(rwe_ref, stimT_ref, pslab_ref, out_ref):
    """Whole forward pass in one invocation; all operands are whole-array VMEM refs."""
    # ---- basis weights (+ x0 term), z-score already folded into A_full / bias_small ----
    a_full = pslab_ref[ROW_A:ROW_A + NB1, :]                                  # (7, 128)
    bias_s = pslab_ref[ROW_BS:ROW_BS + NB1, 0:BD]                             # (7, 8)
    bw_small = jnp.dot(a_full, rwe_ref[...],
                       preferred_element_type=jnp.float32) + bias_s           # (7, 8)
    e_mat = pslab_ref[ROW_E:ROW_E + BD, :]                                    # (8, 128)
    bw_e = jnp.dot(bw_small, e_mat, preferred_element_type=jnp.float32)       # (7, 128)

    # ---- Bases MLP, transposed: features on sublanes, (b,t) samples on lanes ----
    w0t = pslab_ref[ROW_W0T:ROW_W0T + LATENT, 0:STIMDIM]                      # (32, 3)
    b0c = pslab_ref[ROW_B0:ROW_B0 + LATENT, 0:1]                              # (32, 1)
    h = jnp.maximum(jnp.dot(w0t, stimT_ref[...],
                            preferred_element_type=jnp.float32) + b0c, 0.0)   # (32, 32)
    w1t = pslab_ref[ROW_W1T:ROW_W1T + LATENT, 0:LATENT]                       # (32, 32)
    b1c = pslab_ref[ROW_B1:ROW_B1 + LATENT, 0:1]                              # (32, 1)
    h = jnp.maximum(jnp.dot(w1t, h, preferred_element_type=jnp.float32) + b1c, 0.0)
    w2t = pslab_ref[ROW_W2T:ROW_W2T + NB1, 0:LATENT]                          # (7, 32)
    b2c = pslab_ref[ROW_B2:ROW_B2 + NB1, 0:1]                                 # (7, 1)
    bases_t = jnp.dot(w2t, h, preferred_element_type=jnp.float32) + b2c       # (7, 32)
    r_mat = pslab_ref[ROW_R:ROW_R + BT, :]                                    # (32, 128)
    bases_e = jnp.dot(bases_t, r_mat, preferred_element_type=jnp.float32)     # (7, 128)

    # preds[c] = sum_n bases[b,t,n]*bw[b,n,d] + x0[b,d]  (row NUM_BASES carries x0)
    out_ref[...] = jnp.sum(bases_e * bw_e, axis=0, keepdims=True)             # (1, 128)


def prepare_params(params):
    """One-time parameter packing (hoisted out of the per-call path)."""
    mean = np.asarray(params["mean"], np.float32)          # (1, D)
    std  = np.asarray(params["std"], np.float32)           # (1, D)
    istd = 1.0 / std
    wbw = np.asarray(params["wbw"], np.float32)            # (RD, NB*D), out = x @ W + b
    bbw = np.asarray(params["bbw"], np.float32)            # (NB*D,)

    # column permutation: ours[:, n*D + d] == torch_output[:, d*NB + n]
    p = np.arange(NUM_BASES * IN_DIM)
    perm = (p % IN_DIM) * NUM_BASES + (p // IN_DIM)
    w_perm = wbw[:, perm]
    b_perm = bbw[perm]

    # fold the z-score into the matmul:  ((x - m) * istd) @ W  ==  x @ (istd*W) + (b - m*istd @ W)
    mean_flat = np.tile(mean[0], RUNWAY)                   # (RD,)
    istd_flat = np.tile(istd[0], RUNWAY)                   # (RD,)
    w_z = w_perm * istd_flat[:, None]
    b_z = b_perm - (mean_flat * istd_flat) @ w_perm

    # A_full[n, k*D + d] = w_z[k, n*D + d];  extra row produces x0 = zscore(runway[:, -1, :])
    a_full = np.zeros((NB1, KD), np.float32)
    a_full[:NUM_BASES] = np.transpose(
        w_z.reshape(RD, NUM_BASES, IN_DIM), (1, 0, 2)).reshape(NUM_BASES, KD)
    for d in range(IN_DIM):
        a_full[NUM_BASES, ((RUNWAY - 1) * IN_DIM + d) * IN_DIM + d] = istd[0, d]

    bias_small = np.zeros((NB1, BD), np.float32)
    bias_small[:NUM_BASES] = np.tile(
        b_z.reshape(NUM_BASES, 1, IN_DIM), (1, B, 1)).reshape(NUM_BASES, BD)
    bias_small[NUM_BASES] = np.tile(-mean[0] * istd[0], B)

    # E[b*D+d, c] = 1 iff (b, d) match lane c = b'*T*D + t*D + d'
    e_mat = np.zeros((BD, C), np.float32)
    blk = np.tile(np.eye(IN_DIM, dtype=np.float32), (1, TRIAL_LEN))    # (D, T*D)
    for b in range(B):
        e_mat[b * IN_DIM:(b + 1) * IN_DIM,
              b * TRIAL_LEN * IN_DIM:(b + 1) * TRIAL_LEN * IN_DIM] = blk

    # R[j, c] = 1 iff j == c // D  (j = b*T + t)
    r_mat = np.repeat(np.eye(BT, dtype=np.float32), IN_DIM, axis=1)    # (32, 128)

    w0t = np.asarray(params["w0"], np.float32).T                       # (L, S)
    w1t = np.asarray(params["w1"], np.float32).T                       # (L, L)
    w2t_ext = np.zeros((NB1, LATENT), np.float32)
    w2t_ext[:NUM_BASES] = np.asarray(params["w2"], np.float32).T
    b2c_ext = np.zeros((NB1, 1), np.float32)
    b2c_ext[:NUM_BASES, 0] = np.asarray(params["b2"], np.float32)
    b2c_ext[NUM_BASES, 0] = 1.0                                        # multiplies the x0 row

    slab = np.zeros((SLAB_ROWS, SLAB_COLS), np.float32)
    slab[ROW_A:ROW_A + NB1, :KD] = a_full
    slab[ROW_E:ROW_E + BD, :C] = e_mat
    slab[ROW_R:ROW_R + BT, :C] = r_mat
    slab[ROW_W0T:ROW_W0T + LATENT, :STIMDIM] = w0t
    slab[ROW_W1T:ROW_W1T + LATENT, :LATENT] = w1t
    slab[ROW_W2T:ROW_W2T + NB1, :LATENT] = w2t_ext
    slab[ROW_BS:ROW_BS + NB1, :BD] = bias_small
    slab[ROW_B0:ROW_B0 + LATENT, 0:1] = np.asarray(params["b0"], np.float32)[:, None]
    slab[ROW_B1:ROW_B1 + LATENT, 0:1] = np.asarray(params["b1"], np.float32)[:, None]
    slab[ROW_B2:ROW_B2 + NB1, 0:1] = b2c_ext
    return jnp.asarray(slab)


@jax.jit
def tbfm_forward(runway, stiminds, pslab):
    """runway: (B, RUNWAY, IN_DIM), stiminds: (B, TRIAL_LEN, STIMDIM) -> (B, TRIAL_LEN, IN_DIM)."""
    # Per-call layout plumbing only (one small XLA fusion): raw runway expanded so the
    # kernel's K=128 matmul sees rwe[k*D+d', b*D+d] = runway_flat[b, k] * (d'==d).
    rwflat = runway.reshape(B, RD)
    eye_d = jnp.eye(IN_DIM, dtype=runway.dtype)
    rwe = (rwflat.T[:, None, :, None] * eye_d[None, :, None, :]).reshape(KD, BD)   # (128, 8)
    stim_t = stiminds.reshape(BT, STIMDIM).T                                        # (3, 32)

    out = pl.pallas_call(
        tbfm_kernel,
        out_shape=jax.ShapeDtypeStruct((1, C), jnp.float32),
        in_specs=[pl.BlockSpec(memory_space=pltpu.MemorySpace.VMEM)] * 3,
        out_specs=pl.BlockSpec(memory_space=pltpu.MemorySpace.VMEM),
    )(rwe, stim_t, pslab)
    return out.reshape(B, TRIAL_LEN, IN_DIM)


def init_params(key):
    """Deterministic parameter init mimicking nn.Linear defaults (U(+-1/sqrt(fan_in)))."""
    ks = jax.random.split(key, 5)

    def linear(k, fan_in, fan_out):
        kw, kb = jax.random.split(k)
        lim = 1.0 / np.sqrt(fan_in)
        w = jax.random.uniform(kw, (fan_in, fan_out), jnp.float32, -lim, lim)
        b = jax.random.uniform(kb, (fan_out,), jnp.float32, -lim, lim)
        return w, b

    wbw, bbw = linear(ks[0], RUNWAY * IN_DIM, NUM_BASES * IN_DIM)      # basis_weighting
    w0, b0 = linear(ks[1], STIMDIM, LATENT)                            # Bases MLP
    w1, b1 = linear(ks[2], LATENT, LATENT)
    w2, b2 = linear(ks[3], LATENT, NUM_BASES)

    # z-score stats from a synthetic "batchy" batch, as in TBFM.set_z_params
    # (torch.mean / torch.std -> unbiased std, ddof=1).
    batchy = jax.random.normal(ks[4], (B, 12, IN_DIM), jnp.float32) * 2.0 + 0.5
    flat = batchy.reshape(-1, IN_DIM)
    mean = jnp.mean(flat, axis=0, keepdims=True)                       # (1, IN_DIM)
    std = jnp.std(flat, axis=0, ddof=1, keepdims=True)                 # (1, IN_DIM)

    return dict(mean=mean, std=std, wbw=wbw, bbw=bbw,
                w0=w0, b0=b0, w1=w1, b1=b1, w2=w2, b2=b2)


def tbfm_reference(runway, stiminds, params):
    """Pure-JAX reference matching the PyTorch forward semantics."""
    rw = (runway - params["mean"]) / params["std"]
    x0 = rw[:, -1:, :]
    flat = rw.reshape(B, RUNWAY * IN_DIM)
    bw = flat @ params["wbw"] + params["bbw"]
    bw = bw.reshape(B, IN_DIM, NUM_BASES)                              # unflatten(1, (in_dim, num_bases))
    h = jax.nn.relu(stiminds @ params["w0"] + params["b0"])
    h = jax.nn.relu(h @ params["w1"] + params["b1"])
    bases = h @ params["w2"] + params["b2"]                            # (B, T, NB)
    preds = jnp.einsum("bdn,btn->btd", bw, bases) + x0                 # (bw @ bases^T)^T + x0
    return preds


if __name__ == "__main__":
    key = jax.random.PRNGKey(0)
    kp, kr, ks = jax.random.split(key, 3)
    params = init_params(kp)
    pslab = prepare_params(params)          # one-time packing of all parameters into a single slab
    runway = jax.random.normal(kr, (B, RUNWAY, IN_DIM), jnp.float32) * 2.0 + 0.5
    stiminds = jax.random.normal(ks, (B, TRIAL_LEN, STIMDIM), jnp.float32)

    out = tbfm_forward(runway, stiminds, pslab)
    out = jax.block_until_ready(out)

    ref = tbfm_reference(runway, stiminds, params)
    assert out.shape == (B, TRIAL_LEN, IN_DIM)
    np.testing.assert_allclose(np.asarray(out), np.asarray(ref), rtol=1e-4, atol=1e-4)
    print("KERNEL_OK")
</pallas_src>

<mosaic_0001>
module attributes {stable_mosaic.version = 11 : i64} {
  func.func @tbfm_kernel(%arg0: memref<128x8xf32, #tpu.memory_space<vmem>>, %arg1: memref<3x32xf32, #tpu.memory_space<vmem>>, %arg2: memref<200x128xf32, #tpu.memory_space<vmem>>, %arg3: memref<1x128xf32, #tpu.memory_space<vmem>>) attributes {dimension_semantics = [], scalar_prefetch = 0 : i64, scratch_operands = 0 : i64, tpu.core_type = #tpu.core_type<tc>} {
    %c0 = arith.constant 0 : index
    %c0_0 = arith.constant 0 : index
    %0 = vector.load %arg2[%c0, %c0_0] : memref<200x128xf32, #tpu.memory_space<vmem>>, vector<7x128xf32>
    %c120 = arith.constant 120 : index
    %c0_1 = arith.constant 0 : index
    %1 = vector.load %arg2[%c120, %c0_1] : memref<200x128xf32, #tpu.memory_space<vmem>>, vector<7x8xf32>
    %c0_2 = arith.constant 0 : index
    %c0_3 = arith.constant 0 : index
    %2 = vector.load %arg0[%c0_2, %c0_3] : memref<128x8xf32, #tpu.memory_space<vmem>>, vector<128x8xf32>
    %cst = arith.constant dense<0.000000e+00> : vector<7x8xf32>
    %3 = tpu.matmul %0, %2, %cst {dimension_numbers = #tpu.dot_dimension_numbers<[1], [0], [0], [1], [0, 0, 1, 1], [], []>} : vector<7x128xf32>, vector<128x8xf32>, vector<7x8xf32> -> vector<7x8xf32>
    %4 = arith.addf %3, %1 : vector<7x8xf32>
    %c8 = arith.constant 8 : index
    %c0_4 = arith.constant 0 : index
    %5 = vector.load %arg2[%c8, %c0_4] : memref<200x128xf32, #tpu.memory_space<vmem>>, vector<8x128xf32>
    %cst_5 = arith.constant dense<0.000000e+00> : vector<7x128xf32>
    %6 = tpu.matmul %4, %5, %cst_5 {dimension_numbers = #tpu.dot_dimension_numbers<[1], [0], [0], [1], [0, 0, 1, 1], [], []>} : vector<7x8xf32>, vector<8x128xf32>, vector<7x128xf32> -> vector<7x128xf32>
    %c48 = arith.constant 48 : index
    %c0_6 = arith.constant 0 : index
    %7 = vector.load %arg2[%c48, %c0_6] : memref<200x128xf32, #tpu.memory_space<vmem>>, vector<32x3xf32>
    %c128 = arith.constant 128 : index
    %c0_7 = arith.constant 0 : index
    %8 = vector.load %arg2[%c128, %c0_7] : memref<200x128xf32, #tpu.memory_space<vmem>>, vector<32x1xf32>
    %c0_8 = arith.constant 0 : index
    %c0_9 = arith.constant 0 : index
    %9 = vector.load %arg1[%c0_8, %c0_9] : memref<3x32xf32, #tpu.memory_space<vmem>>, vector<3x32xf32>
    %cst_10 = arith.constant dense<0.000000e+00> : vector<32x32xf32>
    %10 = tpu.matmul %7, %9, %cst_10 {dimension_numbers = #tpu.dot_dimension_numbers<[1], [0], [0], [1], [0, 0, 1, 1], [], []>} : vector<32x3xf32>, vector<3x32xf32>, vector<32x32xf32> -> vector<32x32xf32>
    %11 = vector.broadcast %8 : vector<32x1xf32> to vector<32x32xf32>
    %12 = arith.addf %10, %11 : vector<32x32xf32>
    %cst_11 = arith.constant 0.000000e+00 : f32
    %13 = vector.broadcast %cst_11 : f32 to vector<32x32xf32>
    %14 = arith.maximumf %12, %13 : vector<32x32xf32>
    %c80 = arith.constant 80 : index
    %c0_12 = arith.constant 0 : index
    %15 = vector.load %arg2[%c80, %c0_12] : memref<200x128xf32, #tpu.memory_space<vmem>>, vector<32x32xf32>
    %c160 = arith.constant 160 : index
    %c0_13 = arith.constant 0 : index
    %16 = vector.load %arg2[%c160, %c0_13] : memref<200x128xf32, #tpu.memory_space<vmem>>, vector<32x1xf32>
    %cst_14 = arith.constant dense<0.000000e+00> : vector<32x32xf32>
    %17 = tpu.matmul %15, %14, %cst_14 {dimension_numbers = #tpu.dot_dimension_numbers<[1], [0], [0], [1], [0, 0, 1, 1], [], []>} : vector<32x32xf32>, vector<32x32xf32>, vector<32x32xf32> -> vector<32x32xf32>
    %18 = vector.broadcast %16 : vector<32x1xf32> to vector<32x32xf32>
    %19 = arith.addf %17, %18 : vector<32x32xf32>
    %cst_15 = arith.constant 0.000000e+00 : f32
    %20 = vector.broadcast %cst_15 : f32 to vector<32x32xf32>
    %21 = arith.maximumf %19, %20 : vector<32x32xf32>
    %c112 = arith.constant 112 : index
    %c0_16 = arith.constant 0 : index
    %22 = vector.load %arg2[%c112, %c0_16] : memref<200x128xf32, #tpu.memory_space<vmem>>, vector<7x32xf32>
    %c192 = arith.constant 192 : index
    %c0_17 = arith.constant 0 : index
    %23 = vector.load %arg2[%c192, %c0_17] : memref<200x128xf32, #tpu.memory_space<vmem>>, vector<7x1xf32>
    %cst_18 = arith.constant dense<0.000000e+00> : vector<7x32xf32>
    %24 = tpu.matmul %22, %21, %cst_18 {dimension_numbers = #tpu.dot_dimension_numbers<[1], [0], [0], [1], [0, 0, 1, 1], [], []>} : vector<7x32xf32>, vector<32x32xf32>, vector<7x32xf32> -> vector<7x32xf32>
    %25 = vector.broadcast %23 : vector<7x1xf32> to vector<7x32xf32>
    %26 = arith.addf %24, %25 : vector<7x32xf32>
    %c16 = arith.constant 16 : index
    %c0_19 = arith.constant 0 : index
    %27 = vector.load %arg2[%c16, %c0_19] : memref<200x128xf32, #tpu.memory_space<vmem>>, vector<32x128xf32>
    %cst_20 = arith.constant dense<0.000000e+00> : vector<7x128xf32>
    %28 = tpu.matmul %26, %27, %cst_20 {dimension_numbers = #tpu.dot_dimension_numbers<[1], [0], [0], [1], [0, 0, 1, 1], [], []>} : vector<7x32xf32>, vector<32x128xf32>, vector<7x128xf32> -> vector<7x128xf32>
    %29 = arith.mulf %28, %6 : vector<7x128xf32>
    %cst_21 = arith.constant dense<0.000000e+00> : vector<128xf32>
    %30 = vector.multi_reduction <add>, %29, %cst_21 [0] : vector<7x128xf32> to vector<128xf32>
    %31 = vector.shape_cast %30 : vector<128xf32> to vector<1x128xf32>
    %c0_22 = arith.constant 0 : index
    %c0_23 = arith.constant 0 : index
    %32 = vector.load %arg3[%c0_22, %c0_23] : memref<1x128xf32, #tpu.memory_space<vmem>>, vector<1x128xf32>
    tpu.vector_store %arg3[%c0_22, %c0_23], %31 {strides = array<i32>} : memref<1x128xf32, #tpu.memory_space<vmem>>, vector<1x128xf32>,
    return
  }
}

</mosaic_0001>

<bundles_post_ra>
// kernel: tbfm_forward.1
= control target key start
LH: loop header
LB: loop body
LE: loop exit
PB: predicated region body
PF: predicated region fallthrough
CT: control target
= control target key end

     0   :  { %v801_v0 = vmov 0.0|0.0   ;;  %vm802_vm0 = vmmov 0   ;;  %v803_v4 = vmov 0.0   ;;  %vm219_vm1 = vcmask 1042432   ;;  %s986_s0 = inlined_call_operand.vmem [shape: f32[128,8], index: 0, kind: input, shape index: {}]   ;;  %s987_s2 = inlined_call_operand.vmem [shape: f32[200,128], index: 2, kind: input, shape index: {}]   ;;  %s988_s1 = inlined_call_operand.vmem [shape: f32[3,32], index: 1, kind: input, shape index: {}]   ;;  %s989_s3 = inlined_call_operand.vmem [shape: f32[1,128], index: 3, kind: output, shape index: {}]  }
   0x1   :  { %751 = vmatprep.subr.bf16.mxu0 %v801_v0  ;;  %v16_v1 = vld [vmem:[%s986_s0] sm:$0xff]  ;;  %v17_v2 = vld [vmem:[%s986_s0 + $0x8] sm:$0xff]  ;;  %v18_v3 = vld [vmem:[%s986_s0 + $0x10] sm:$0xff]  ;;  %699 = vmatprep.mubr.msk.f32.mxu0 %vm802_vm0, %v803_v4  ;;  %v804_v31 = vmov 0   ;;  %vm103_vm2 = vcmask 64512   ;;  %vm206_vm3 = vcmask 23552  }
   0x2   :  { %v752_v5 = vpack.c.bf16 %v17_v2, %v16_v1  ;;  %v19_v6 = vld [vmem:[%s986_s0 + $0x18] sm:$0xff]  ;;  %702 = vmatprep.subr.mxu1 %v803_v4  ;;  %704 = vmatprep.mubr.msk.f32.mxu1 %vm802_vm0, %v803_v4  ;;  %v20_v8 = vld [vmem:[%s986_s0 + $0x20] sm:$0xff]  ;;  %v21_v9 = vld [vmem:[%s986_s0 + $0x28] sm:$0xff]  ;;  %vm340_vm4 = vcmask 261120   ;;  %vm600_vm5 = vcmask 1046528  }
   0x3   :  { %v755_v7 = vpack.c.bf16 %v19_v6, %v18_v3  ;;  %v758_v10 = vpack.c.bf16 %v21_v9, %v20_v8  ;;  %v22_v11 = vld [vmem:[%s986_s0 + $0x30] sm:$0xff]  ;;  %v23_v12 = vld [vmem:[%s986_s0 + $0x38] sm:$0xff]  ;;  %v24_v14 = vld [vmem:[%s986_s0 + $0x40] sm:$0xff]  ;;  %799 = vset.pattern.permute.xlu0 %v804_v31  ;;  %800 = vset.pattern.permute.xlu1 %v804_v31 }
   0x4   :  { %753 = vmatpush3.bf16.msra.mxu0 %v752_v5  ;;  %v761_v13 = vpack.c.bf16 %v23_v12, %v22_v11  ;;  %v25_v15 = vld [vmem:[%s986_s0 + $0x48] sm:$0xff]  ;;  %v26_v17 = vld [vmem:[%s986_s0 + $0x50] sm:$0xff]  ;;  %v27_v18 = vld [vmem:[%s986_s0 + $0x58] sm:$0xff] }
   0x5   :  { %754 = vmatprep.subr.bf16.mxu0 %v801_v0  ;;  %v764_v16 = vpack.c.bf16 %v25_v15, %v24_v14  ;;  %v767_v19 = vpack.c.bf16 %v27_v18, %v26_v17  ;;  %v28_v20 = vld [vmem:[%s986_s0 + $0x60] sm:$0xff]  ;;  %v29_v21 = vld [vmem:[%s986_s0 + $0x68] sm:$0xff]  ;;  %v30_v23 = vld [vmem:[%s986_s0 + $0x70] sm:$0xff] }
   0x6   :  { %v770_v22 = vpack.c.bf16 %v29_v21, %v28_v20  ;;  %v31_v24 = vld [vmem:[%s986_s0 + $0x78] sm:$0xff]  ;;  %v14_v26 = vld [vmem:[%s987_s2] sm:$0x7f]  ;;  %v102_v27 = vld [vmem:[%s987_s2 + $0x8] sm:$0xff] }
   0x7   :  { %v773_v25 = vpack.c.bf16 %v31_v24, %v30_v23  ;;  %703 = vmatpush3.msra.mxu1 %v102_v27  ;;  %v185_v28 = vld [vmem:[%s988_s1] sm:$0x7]  ;;  %v183_v30 = vld [vmem:[%s987_s2 + $0x90] sm:$0xff]  ;;  %v182_v32 = vld [vmem:[%s987_s2 + $0x88] sm:$0xff] }
   0x8   :  { %756 = vmatpush3.bf16.msra.mxu0 %v755_v7  ;;  %707 = vmatprep.subr.msk.mxu1 %vm219_vm1, %v185_v28  ;;  %v181_v29 = vld [vmem:[%s987_s2 + $0x80] sm:$0xff]  ;;  %v184_v33 = vld [vmem:[%s987_s2 + $0x98] sm:$0xff]  ;;  %v317_v35 = vld [vmem:[%s987_s2 + $0xa8] sm:$0xff] }
   0x9   :  { %757 = vmatprep.subr.bf16.mxu0 %v801_v0  ;;  %188 = vperm.xlu0 %799, %v181_v29   ;;  %v316_v34 = vld [vmem:[%s987_s2 + $0xa0] sm:$0xff]  ;;  %v318_v36 = vld [vmem:[%s987_s2 + $0xb0] sm:$0xff]  ;;  %v319_v37 = vld [vmem:[%s987_s2 + $0xb8] sm:$0xff] }
   0xa   :  { %198 = vperm.xlu1 %800, %v183_v30   ;;  %v443_v38 = vld [vmem:[%s987_s2 + $0xc0] sm:$0x7f]  ;;  %v15_v39 = vld [vmem:[%s987_s2 + $0x78] sm:$0x7f]  ;;  %v177_v43 = vld [vmem:[%s987_s2 + $0x30] sm:$0xff] }
   0xb   :  { %v178_v44 = vld [vmem:[%s987_s2 + $0x38] sm:$0xff]  ;;  %v179_v45 = vld [vmem:[%s987_s2 + $0x40] sm:$0xff]  ;;  %v180_v46 = vld [vmem:[%s987_s2 + $0x48] sm:$0xff] }
   0xc   :  { %759 = vmatpush3.bf16.msra.mxu0 %v758_v10  ;;  %v312_v47 = vld [vmem:[%s987_s2 + $0x50] sm:$0xff]  ;;  %v313_v6 = vld [vmem:[%s987_s2 + $0x58] sm:$0xff]  ;;  %v314_v7 = vld [vmem:[%s987_s2 + $0x60] sm:$0xff] }
   0xd   :  { %760 = vmatprep.subr.bf16.mxu0 %v801_v0  ;;  %193 = vperm.xlu0 %799, %v182_v32   ;;  %v315_v8 = vld [vmem:[%s987_s2 + $0x68] sm:$0xff]  ;;  %v523_v27 = vld [vmem:[%s987_s2 + $0x18] sm:$0xff]  ;;  %v442_v29 = vld [vmem:[%s987_s2 + $0x70] sm:$0x7f] }
   0xe   :  { %203 = vperm.xlu1 %800, %v184_v33   ;;  %v524_v31 = vld [vmem:[%s987_s2 + $0x20] sm:$0xff]  ;;  %v525_v32 = vld [vmem:[%s987_s2 + $0x28] sm:$0xff] }
   0xf   :  { %v793_v33 = vpack.c.bf16 %v525_v32, %v524_v31 }
  0x10   :  { %762 = vmatpush3.bf16.msra.mxu0 %v761_v13 }
  0x11   :  { %763 = vmatprep.subr.bf16.mxu0 %v801_v0  ;;  %322 = vperm.xlu0 %799, %v316_v34  }
  0x12   :  { %327 = vperm.xlu1 %800, %v317_v35  }
  0x14   :  { %765 = vmatpush3.bf16.msra.mxu0 %v764_v16 }
  0x15   :  { %766 = vmatprep.subr.bf16.mxu0 %v801_v0  ;;  %332 = vperm.xlu0 %799, %v318_v36  }
  0x16   :  { %337 = vperm.xlu1 %800, %v319_v37  }
  0x18   :  { %768 = vmatpush3.bf16.msra.mxu0 %v767_v19 }
  0x19   :  { %769 = vmatprep.subr.bf16.mxu0 %v801_v0  ;;  %446 = vperm.xlu0 %799, %v443_v38  }
  0x1c   :  { %771 = vmatpush3.bf16.msra.mxu0 %v770_v22 }
  0x1d   :  { %772 = vmatprep.subr.bf16.mxu0 %v801_v0 }
  0x20   :  { %774 = vmatpush3.bf16.msra.mxu0 %v773_v25 }
  0x23   :  { %700 = vmatmul.mubr.f32.vlgmr.msra.gmra.mrb[0].mxu0 %v14_v26  ;;  %v522_v26 = vld [vmem:[%s987_s2 + $0x10] sm:$0xff] }
  0x24   :  { %v790_v30 = vpack.c.bf16 %v523_v27, %v522_v26 }
  0x88   :  { %v189_v48 = vpop.permute.xlu0 %188 }
  0x89   :  { %v199_v51 = vpop.permute.xlu1 %198 }
  0x8c   :  { %v194_v52 = vpop.permute.xlu0 %193 }
  0x8d   :  { %v204_v58 = vpop.permute.xlu1 %203 }
  0x90   :  { %v323_v10 = vpop.permute.xlu0 %322 }
  0x91   :  { %v328_v9 = vpop.permute.xlu1 %327 }
  0x94   :  { %v333_v19 = vpop.permute.xlu0 %332 }
  0x95   :  { %v338_v16 = vpop.permute.xlu1 %337 }
  0x98   :  { %v447_v34 = vpop.permute.xlu0 %446 }
  0xf6   :  { %v98_v40 = vpop.f32.mrb[0].mxu0 }
  0xf7   :  { %v99_v41 = vadd.f32 %v98_v40, %v15_v39  ;;  %v701_v42 = vpop.f32.mrb[1].mxu0 }
  0xf9   :  { %705 = vmatmul.mubr.msk.f32.vlgmr.msra.gmra.mrb[0].mxu1 %vm103_vm2, %v99_v41 }
  0xfa   :  { %708 = vmatpush3.msk.msra.mxu1 %vm219_vm1, %v185_v28  ;;  %709 = vmatprep.mubr.msk.f32.mxu1 %vm206_vm3, %v177_v43 }
  0xfd   :  { %710 = vmatmul.mubr.msk.f32.vlgmr.msra.gmra.mrb[2].mxu1 %vm206_vm3, %v178_v44 }
  0xfe   :  { %712 = vmatprep.mubr.msk.f32.mxu1 %vm206_vm3, %v179_v45 }
 0x101   :  { %713 = vmatmul.mubr.msk.f32.gmra.mrb[4].mxu1 %vm206_vm3, %v180_v46 }
 0x102   :  { %723 = vmatprep.mubr.msk.f32.mxu1 %vm340_vm4, %v312_v47 }
 0x1cc   :  { %v943_v49 = vpop.f32.mrb[0].mxu1 }
 0x1cd   :  { %v706_v50 = vpop.f32.mrb[1].mxu1 }
 0x1d0   :  { %v711_v53 = vpop.f32.mrb[2].mxu1 }
 0x1d1   :  { %v295_v54 = vadd.f32 %v711_v53, %v194_v52  ;;  %v289_v55 = vpop.f32.mrb[3].mxu1 }
 0x1d2   :  { %v290_v56 = vadd.f32 %v289_v55, %v189_v48 }
 0x1d3   :  { %v309_v57 = vmax.f32 %v295_v54, 0.0 }
 0x1d4   :  { %v308_v59 = vmax.f32 %v290_v56, 0.0  ;;  %v714_v60 = vpop.f32.mrb[4].mxu1 }
 0x1d5   :  { %v305_v61 = vadd.f32 %v714_v60, %v204_v58  ;;  %v299_v62 = vpop.f32.mrb[5].mxu1 }
 0x1d6   :  { %v775_v63 = vpack.c.bf16 %v309_v57, %v308_v59  ;;  %v300_v1 = vadd.f32 %v299_v62, %v199_v51 }
 0x1d7   :  { %v311_v2 = vmax.f32 %v305_v61, 0.0 }
 0x1d8   :  { %v310_v3 = vmax.f32 %v300_v1, 0.0  ;;  %776 = vmatprep.subr.bf16.mxu1 %v775_v63 }
 0x1d9   :  { %778 = vmatpush3.bf16.msra.mxu1 %v775_v63 }
 0x1da   :  { %v779_v5 = vpack.c.bf16 %v311_v2, %v310_v3 }
 0x1dc   :  { %780 = vmatprep.subr.bf16.mxu1 %v779_v5 }
 0x1dd   :  { %782 = vmatpush3.bf16.msra.mxu1 %v779_v5 }
 0x1de   :  { %783 = vmatprep.subr.bf16.mxu1 %v801_v0 }
 0x1e0   :  { %724 = vmatmul.mubr.msk.f32.vlgmr.msra.gmra.mrb[6].mxu1 %vm340_vm4, %v313_v6 }
 0x1e1   :  { %726 = vmatprep.mubr.msk.f32.mxu1 %vm340_vm4, %v314_v7 }
 0x1e4   :  { %727 = vmatmul.mubr.msk.f32.gmra.mrb[8].mxu1 %vm340_vm4, %v315_v8 }
 0x1e5   :  { %737 = vmatprep.mubr.msk.f32.mxu1 %vm802_vm0, %v803_v4 }
 0x2b3   :  { %v725_v11 = vpop.f32.mrb[6].mxu1 }
 0x2b4   :  { %v425_v12 = vadd.f32 %v725_v11, %v328_v9  ;;  %v419_v13 = vpop.f32.mrb[7].mxu1 }
 0x2b5   :  { %v420_v14 = vadd.f32 %v419_v13, %v323_v10 }
 0x2b6   :  { %v439_v15 = vmax.f32 %v425_v12, 0.0 }
 0x2b7   :  { %v438_v17 = vmax.f32 %v420_v14, 0.0  ;;  %v728_v18 = vpop.f32.mrb[8].mxu1 }
 0x2b8   :  { %v435_v20 = vadd.f32 %v728_v18, %v338_v16  ;;  %v429_v21 = vpop.f32.mrb[9].mxu1 }
 0x2b9   :  { %v784_v22 = vpack.c.bf16 %v439_v15, %v438_v17  ;;  %v430_v23 = vadd.f32 %v429_v21, %v333_v19 }
 0x2ba   :  { %v441_v24 = vmax.f32 %v435_v20, 0.0 }
 0x2bb   :  { %v440_v25 = vmax.f32 %v430_v23, 0.0  ;;  %785 = vmatpush3.bf16.msra.mxu1 %v784_v22 }
 0x2bc   :  { %786 = vmatprep.subr.bf16.mxu1 %v801_v0 }
 0x2bd   :  { %v787_v28 = vpack.c.bf16 %v441_v24, %v440_v25 }
 0x2bf   :  { %788 = vmatpush3.bf16.msra.mxu1 %v787_v28 }
 0x2c0   :  { %789 = vmatprep.subr.bf16.mxu1 %v801_v0 }
 0x2c2   :  { %738 = vmatmul.mubr.msk.f32.vlgmr.msra.gmra.mrb[10].mxu1 %vm340_vm4, %v442_v29 }
 0x2c3   :  { %791 = vmatpush3.bf16.msra.mxu1 %v790_v30  ;;  %748 = vmatprep.mubr.msk.f32.mxu1 %vm802_vm0, %v803_v4 }
 0x2c4   :  { %792 = vmatprep.subr.bf16.mxu1 %v801_v0 }
 0x2c7   :  { %794 = vmatpush3.bf16.msra.mxu1 %v793_v33 }
 0x395   :  { %v518_v35 = vpop.f32.mrb[10].mxu1 }
 0x396   :  { %v519_v36 = vadd.f32 %v518_v35, %v447_v34  ;;  %v739_v37 = vpop.f32.mrb[11].mxu1 }
 0x398   :  { %749 = vmatmul.mubr.msk.f32.vlgmr.msra.gmra.mrb[12].mxu1 %vm340_vm4, %v519_v36 }
 0x46b   :  { %v595_v38 = vpop.f32.mrb[12].mxu1 }
 0x46c   :  { %v599_v0 = vmul.f32 %v595_v38, %v943_v49  ;;  %v750_v4 = vpop.f32.mrb[13].mxu1 }
 0x46e   :  { %v601_v39 = vsel %vm600_vm5, %v599_v0, 0.0 }
 0x46f   :  { %v602_v40 = vrot.slane %v601_v39, 4 }
 0x471   :  { %v603_v41 = vadd.f32 %v602_v40, %v601_v39 }
 0x473   :  { %v604_v42 = vrot.slane %v603_v41, 2 }
 0x475   :  { %v605_v43 = vadd.f32 %v604_v42, %v603_v41 }
 0x477   :  { %v606_v44 = vrot.slane %v605_v43, 1 }
 0x479   :  { %v607_v45 = vadd.f32 %v606_v44, %v605_v43 }
 0x47b   :  { %608 = vst [vmem:[%s989_s3] sm:$0x1] %v607_v45 }

</bundles_post_ra>
